<compile_context>
chip_gen: v6e
topology: v6e:2x2x1
jax: 0.10.0
libtpu: 0.0.40
codegen_flags: <defaults>
</compile_context>

<pallas_src>
import functools

import jax
import jax.numpy as jnp
from jax import lax
from jax.experimental import pallas as pl
from jax.experimental.pallas import tpu as pltpu

LANES = 128
MAX_TILE_ROWS = 1024   # (1024, 128) f32 tile = 512 KiB per buffer


def _bce_kernel(y_true_ref, y_pred_ref, w_ref, out_ref, acc_ref, *,
                n_valid, block_rows, needs_mask):
    j = pl.program_id(1)

    @pl.when(j == 0)
    def _():
        acc_ref[...] = jnp.zeros_like(acc_ref)

    x = y_pred_ref[...].astype(jnp.float32)   # logits
    z = y_true_ref[...].astype(jnp.float32)   # targets
    w = w_ref[...].astype(jnp.float32)        # elementwise weight

    if needs_mask:
        # Global element index of every slot in this block; anything >= n_valid
        # (ragged last block, lane padding, clamped duplicate blocks) is zeroed
        # on the inputs, so unspecified OOB data can't poison the sum.
        # (int32 index math: fine for < 2^31 elements per tensor.)
        gb = pl.program_id(0) * pl.num_programs(1) + j          # global block id
        base = gb * (block_rows * LANES)
        rid = lax.broadcasted_iota(jnp.int32, (block_rows, LANES), 0)
        cid = lax.broadcasted_iota(jnp.int32, (block_rows, LANES), 1)
        valid = (base + rid * LANES + cid) < n_valid
        x = jnp.where(valid, x, 0.0)
        z = jnp.where(valid, z, 0.0)
        w = jnp.where(valid, w, 0.0)

    # Numerically-stable BCE-with-logits (matches PyTorch):
    #   l = max(x, 0) - x*z + log(1 + exp(-|x|))
    l = jnp.maximum(x, 0.0) - x * z + jnp.log1p(jnp.exp(-jnp.abs(x)))
    acc_ref[...] += w * l          # pure VPU adds; no per-step reduction

    @pl.when(j == pl.num_programs(1) - 1)
    def _():
        # Single tree-reduce per partial; write the scalar into lane (0,0) of
        # this partial's (8,128) output block (rest zeros; wrapper sums all).
        total = jnp.sum(acc_ref[...])
        rid = lax.broadcasted_iota(jnp.int32, (8, LANES), 0)
        cid = lax.broadcasted_iota(jnp.int32, (8, LANES), 1)
        out_ref[...] = jnp.where((rid == 0) & (cid == 0), total, 0.0)


def shape_bce_loss(y_true, y_pred, weight):
    """F.binary_cross_entropy_with_logits(y_pred, y_true, weight), mean reduction."""
    assert y_true.shape == y_pred.shape == weight.shape
    n = y_true.size

    # Flatten row-major (free for contiguous arrays). Only pad (a copy) when the
    # element count is not a multiple of a single (8, 128) tile.
    tile_elems = 8 * LANES
    n_pad = ((n + tile_elems - 1) // tile_elems) * tile_elems

    def prep(a):
        flat = a.reshape(-1)
        if n_pad != n:
            flat = jnp.pad(flat, (0, n_pad - n))
        return flat.reshape(n_pad // LANES, LANES)

    yt, yp, w = prep(y_true), prep(y_pred), prep(weight)

    rows = n_pad // LANES                      # multiple of 8
    block_rows = min(MAX_TILE_ROWS, rows)      # multiple of 8
    num_blocks = (rows + block_rows - 1) // block_rows

    # Split blocks across two partials on a leading "parallel" axis so v7x's
    # two TensorCores each stream half the rows; degenerates to 1 partial for
    # tiny inputs. Single-TC chips just run the axis sequentially.
    num_partials = 2 if num_blocks >= 2 else 1
    bpp = (num_blocks + num_partials - 1) // num_partials   # blocks per partial
    total_blocks = num_partials * bpp

    # Masking is only compiled in when some block slot covers elements >= n.
    needs_mask = (total_blocks * block_rows * LANES) != n

    if total_blocks == num_blocks:
        in_index_map = lambda p, j: (p * bpp + j, 0)
    else:
        last_blk = num_blocks - 1   # clamp: duplicated blocks are fully masked out
        in_index_map = lambda p, j: (jnp.minimum(p * bpp + j, last_blk), 0)

    tile_spec = pl.BlockSpec((block_rows, LANES), in_index_map)

    kernel = functools.partial(
        _bce_kernel, n_valid=n, block_rows=block_rows, needs_mask=needs_mask)

    partials = pl.pallas_call(
        kernel,
        out_shape=jax.ShapeDtypeStruct((num_partials * 8, LANES), jnp.float32),
        grid_spec=pltpu.PrefetchScalarGridSpec(
            num_scalar_prefetch=0,
            grid=(num_partials, bpp),
            in_specs=[tile_spec, tile_spec, tile_spec],
            out_specs=pl.BlockSpec((8, LANES), lambda p, j: (p, 0)),
            scratch_shapes=[pltpu.VMEM((block_rows, LANES), jnp.float32)],
        ),
        compiler_params=pltpu.CompilerParams(
            dimension_semantics=("parallel", "arbitrary"),
        ),
    )(yt, yp, w)

    return jnp.sum(partials) * (1.0 / float(n))


def _reference(y_true, y_pred, weight):
    x = y_pred.astype(jnp.float32)
    z = y_true.astype(jnp.float32)
    w = weight.astype(jnp.float32)
    l = jnp.maximum(x, 0.0) - x * z + jnp.log1p(jnp.exp(-jnp.abs(x)))
    return jnp.mean(w * l)


if __name__ == "__main__":
    key = jax.random.PRNGKey(0)
    k1, k2, k3 = jax.random.split(key, 3)

    # Small NCHW shapes consistent with a segmentation-style loss.
    B, C, H, W = 2, 4, 16, 16
    y_pred = jax.random.normal(k1, (B, C, H, W), dtype=jnp.float32)            # logits
    y_true = (jax.random.uniform(k2, (B, C, H, W)) > 0.5).astype(jnp.float32)  # binary targets
    weight = jax.random.uniform(k3, (B, C, H, W), dtype=jnp.float32) + 0.5     # shape weights

    loss = shape_bce_loss(y_true, y_pred, weight)
    jax.block_until_ready(loss)

    ref = _reference(y_true, y_pred, weight)
    assert jnp.allclose(loss, ref, rtol=1e-5, atol=1e-6), (loss, ref)
    print("KERNEL_OK")
</pallas_src>

<mosaic_0001>
module attributes {stable_mosaic.version = 11 : i64} {
  func.func @_bce_kernel(%arg0: i32, %arg1: i32, %arg2: memref<16x128xf32, #tpu.memory_space<vmem>>, %arg3: memref<16x128xf32, #tpu.memory_space<vmem>>, %arg4: memref<16x128xf32, #tpu.memory_space<vmem>>, %arg5: memref<8x128xf32, #tpu.memory_space<vmem>>, %arg6: memref<16x128xf32, #tpu.memory_space<vmem>>) attributes {dimension_semantics = [#tpu.dimension_semantics<parallel>, #tpu.dimension_semantics<arbitrary>], iteration_bounds = array<i64: 1, 1>, scalar_prefetch = 0 : i64, scratch_operands = 1 : i64, tpu.core_type = #tpu.core_type<tc>, window_params = [{transform_indices = @transform_0, window_bounds = array<i64: 16, 128>}, {transform_indices = @transform_1, window_bounds = array<i64: 16, 128>}, {transform_indices = @transform_2, window_bounds = array<i64: 16, 128>}, {transform_indices = @transform_3, window_bounds = array<i64: 8, 128>}]} {
    %c0_i32 = arith.constant 0 : i32
    %0 = arith.cmpi eq, %arg1, %c0_i32 : i32
    %1 = arith.extui %0 : i1 to i32
    %c0_i32_0 = arith.constant 0 : i32
    %2 = arith.cmpi ne, %1, %c0_i32_0 : i32
    scf.if %2 {
      %cst_13 = arith.constant 0.000000e+00 : f32
      %23 = vector.broadcast %cst_13 : f32 to vector<16x128xf32>
      %c0_14 = arith.constant 0 : index
      %c0_15 = arith.constant 0 : index
      %24 = vector.load %arg6[%c0_14, %c0_15] : memref<16x128xf32, #tpu.memory_space<vmem>>, vector<16x128xf32>
      tpu.vector_store %arg6[%c0_14, %c0_15], %23 {strides = array<i32>} : memref<16x128xf32, #tpu.memory_space<vmem>>, vector<16x128xf32>,
    } else {
    }
    %c0 = arith.constant 0 : index
    %c0_1 = arith.constant 0 : index
    %3 = vector.load %arg3[%c0, %c0_1] : memref<16x128xf32, #tpu.memory_space<vmem>>, vector<16x128xf32>
    %c0_2 = arith.constant 0 : index
    %c0_3 = arith.constant 0 : index
    %4 = vector.load %arg2[%c0_2, %c0_3] : memref<16x128xf32, #tpu.memory_space<vmem>>, vector<16x128xf32>
    %c0_4 = arith.constant 0 : index
    %c0_5 = arith.constant 0 : index
    %5 = vector.load %arg4[%c0_4, %c0_5] : memref<16x128xf32, #tpu.memory_space<vmem>>, vector<16x128xf32>
    %cst = arith.constant 0.000000e+00 : f32
    %6 = vector.broadcast %cst : f32 to vector<16x128xf32>
    %7 = arith.maximumf %3, %6 : vector<16x128xf32>
    %8 = arith.mulf %3, %4 : vector<16x128xf32>
    %9 = arith.subf %7, %8 : vector<16x128xf32>
    %10 = math.absf %3 : vector<16x128xf32>
    %cst_6 = arith.constant 0.000000e+00 : f32
    %11 = vector.broadcast %cst_6 : f32 to vector<16x128xf32>
    %12 = arith.subf %11, %10 : vector<16x128xf32>
    %13 = math.exp %12 : vector<16x128xf32>
    %14 = math.log1p %13 : vector<16x128xf32>
    %15 = arith.addf %9, %14 : vector<16x128xf32>
    %c0_7 = arith.constant 0 : index
    %c0_8 = arith.constant 0 : index
    %16 = vector.load %arg6[%c0_7, %c0_8] : memref<16x128xf32, #tpu.memory_space<vmem>>, vector<16x128xf32>
    %17 = arith.mulf %5, %15 : vector<16x128xf32>
    %18 = arith.addf %16, %17 : vector<16x128xf32>
    %c0_9 = arith.constant 0 : index
    %c0_10 = arith.constant 0 : index
    %19 = vector.load %arg6[%c0_9, %c0_10] : memref<16x128xf32, #tpu.memory_space<vmem>>, vector<16x128xf32>
    tpu.vector_store %arg6[%c0_9, %c0_10], %18 {strides = array<i32>} : memref<16x128xf32, #tpu.memory_space<vmem>>, vector<16x128xf32>,
    %c0_i32_11 = arith.constant 0 : i32
    %20 = arith.cmpi eq, %arg1, %c0_i32_11 : i32
    %21 = arith.extui %20 : i1 to i32
    %c0_i32_12 = arith.constant 0 : i32
    %22 = arith.cmpi ne, %21, %c0_i32_12 : i32
    scf.if %22 {
      %c0_13 = arith.constant 0 : index
      %c0_14 = arith.constant 0 : index
      %23 = vector.load %arg6[%c0_13, %c0_14] : memref<16x128xf32, #tpu.memory_space<vmem>>, vector<16x128xf32>
      %24 = vector.shape_cast %23 : vector<16x128xf32> to vector<1x16x128xf32>
      %cst_15 = arith.constant dense<0.000000e+00> : vector<1xf32>
      %25 = vector.multi_reduction <add>, %24, %cst_15 [1, 2] : vector<1x16x128xf32> to vector<1xf32>
      %26 = vector.shape_cast %25 : vector<1xf32> to vector<1x1x1xf32>
      %27 = vector.extract %26[0, 0, 0] : f32 from vector<1x1x1xf32>
      %28 = tpu.iota {dimensions = array<i32: 0>} : vector<8x128xi32>
      %29 = tpu.iota {dimensions = array<i32: 1>} : vector<8x128xi32>
      %c0_i32_16 = arith.constant 0 : i32
      %30 = vector.broadcast %c0_i32_16 : i32 to vector<8x128xi32>
      %31 = arith.cmpi eq, %28, %30 : vector<8x128xi32>
      %c0_i32_17 = arith.constant 0 : i32
      %32 = vector.broadcast %c0_i32_17 : i32 to vector<8x128xi32>
      %33 = arith.cmpi eq, %29, %32 : vector<8x128xi32>
      %34 = arith.andi %31, %33 : vector<8x128xi1>
      %cst_18 = arith.constant 0.000000e+00 : f32
      %35 = vector.broadcast %27 : f32 to vector<8x128xf32>
      %36 = vector.broadcast %cst_18 : f32 to vector<8x128xf32>
      %37 = arith.select %34, %35, %36 : vector<8x128xi1>, vector<8x128xf32>
      %c0_19 = arith.constant 0 : index
      %c0_20 = arith.constant 0 : index
      %38 = vector.load %arg5[%c0_19, %c0_20] : memref<8x128xf32, #tpu.memory_space<vmem>>, vector<8x128xf32>
      tpu.vector_store %arg5[%c0_19, %c0_20], %37 {strides = array<i32>} : memref<8x128xf32, #tpu.memory_space<vmem>>, vector<8x128xf32>,
    } else {
    }
    return
  }
  func.func @transform_0(%arg0: i32, %arg1: i32) -> (i32, i32) {
    %c1_i32 = arith.constant 1 : i32
    %0 = arith.muli %arg0, %c1_i32 : i32
    %1 = arith.addi %0, %arg1 : i32
    %c0_i32 = arith.constant 0 : i32
    %c0_i32_0 = arith.constant 0 : i32
    return %1, %c0_i32 : i32, i32
  }
  func.func @transform_1(%arg0: i32, %arg1: i32) -> (i32, i32) {
    %c1_i32 = arith.constant 1 : i32
    %0 = arith.muli %arg0, %c1_i32 : i32
    %1 = arith.addi %0, %arg1 : i32
    %c0_i32 = arith.constant 0 : i32
    %c0_i32_0 = arith.constant 0 : i32
    return %1, %c0_i32 : i32, i32
  }
  func.func @transform_2(%arg0: i32, %arg1: i32) -> (i32, i32) {
    %c1_i32 = arith.constant 1 : i32
    %0 = arith.muli %arg0, %c1_i32 : i32
    %1 = arith.addi %0, %arg1 : i32
    %c0_i32 = arith.constant 0 : i32
    %c0_i32_0 = arith.constant 0 : i32
    return %1, %c0_i32 : i32, i32
  }
  func.func @transform_3(%arg0: i32, %arg1: i32) -> (i32, i32) {
    %c0_i32 = arith.constant 0 : i32
    %c0_i32_0 = arith.constant 0 : i32
    return %arg0, %c0_i32 : i32, i32
  }
}

</mosaic_0001>

<bundles_post_ra>
// kernel: tpu_custom_call.1
= control target key start
LH: loop header
LB: loop body
LE: loop exit
PB: predicated region body
PF: predicated region fallthrough
CT: control target
= control target key end

     0   :  { %8 = vsyncpa [#allocation4], 0  ;;  %s309_s0 = inlined_call_operand.hbm [shape: f32[16,128], index: 0, kind: input, shape index: {}]   ;;  %s310_s1 = inlined_call_operand.hbm [shape: f32[16,128], index: 1, kind: input, shape index: {}]   ;;  %s311_s2 = inlined_call_operand.hbm [shape: f32[16,128], index: 2, kind: input, shape index: {}]   ;;  %s312_s3 = inlined_call_operand.hbm [shape: f32[8,128], index: 3, kind: output, shape index: {}]  }
   0x1   :  { %9 = vsyncpa [#allocation7], 0 }
   0x2   :  { %10 = vsyncpa [#allocation5], 0  ;;  %s271_s12 = smov [#allocation6]   ;;  %s272_s14 = smov [#allocation3]  }
   0x3   :  { %s36_s13 = sshll.u32 %s271_s12, 4  ;;  %s20_s15 = sshll.u32 %s272_s14, 4  ;;  %s37_s13 = int_to_ptr.vmem [resolvable:$true] %s36_s13  ;;  %s21_s15 = int_to_ptr.vmem [resolvable:$true] %s20_s15 }
   0x4   :  { %s193_s16 = scalar_lea.vmem %s37_s13, 256  ;;  %p198_p1 = scmp.lt.s32.totalorder %s37_s13, %s37_s13 }
   0x5   :  { %p194_p0 = scmp.ne.s32.totalorder %s37_s13, %s193_s16  ;;  %p199_p2 = scmp.lt.s32.totalorder %s193_s16, %s193_s16 }
   0x7   :  { %p200_p3 = por %p199_p2, %p198_p1 }
   0x9   :  { %p201_p4 = pnand %p200_p3, %p194_p0 }
   0xb   :  { %204 = shalt.err (!%p201_p4)
}
   0xc   :  { %s273_s17 = smov 128   ;;  %s274_s18 = smov 8  }
   0xd   :  { %42 = dma.hbm_to_vmem [thread:$0]  %s310_s1, 256, %s37_s13, [#allocation7], %s273_s17, %s273_s17, %s274_s18  }
   0xe   :  { %s213_s21 = scalar_lea.vmem %s21_s15, 256  ;;  %p218_p6 = scmp.lt.s32.totalorder %s21_s15, %s21_s15 }
   0xf   :  { %p214_p5 = scmp.ne.s32.totalorder %s21_s15, %s213_s21  ;;  %p219_p7 = scmp.lt.s32.totalorder %s213_s21, %s213_s21 }
  0x11   :  { %p220_p8 = por %p219_p7, %p218_p6 }
  0x13   :  { %p221_p9 = pnand %p220_p8, %p214_p5 }
  0x15   :  { %224 = shalt.err (!%p221_p9)
}
  0x16   :  { %26 = dma.hbm_to_vmem [thread:$0]  %s309_s0, 256, %s21_s15, [#allocation4], %s273_s17, %s273_s17, %s274_s18  }
  0x17   :  { %s275_s24 = smov [#allocation8]  }
  0x18   :  { %s52_s25 = sshll.u32 %s275_s24, 4  ;;  %s53_s25 = int_to_ptr.vmem [resolvable:$true] %s52_s25 }
  0x19   :  { %s233_s26 = scalar_lea.vmem %s53_s25, 256  ;;  %p238_p11 = scmp.lt.s32.totalorder %s53_s25, %s53_s25 }
  0x1a   :  { %p234_p10 = scmp.ne.s32.totalorder %s53_s25, %s233_s26  ;;  %p239_p12 = scmp.lt.s32.totalorder %s233_s26, %s233_s26 }
  0x1c   :  { %p240_p13 = por %p239_p12, %p238_p11 }
  0x1e   :  { %p241_p0 = pnand %p240_p13, %p234_p10 }
  0x20   :  { %244 = shalt.err (!%p241_p0)
}
  0x21   :  { %58 = dma.hbm_to_vmem [thread:$0]  %s311_s2, 256, %s53_s25, [#allocation7], %s273_s17, %s273_s17, %s274_s18  }
  0x22   :  { %265 = dma.done.wait [#allocation4], 256  }
  0x23   :  { %266 = vsyncadd [#allocation4], 4294967040 }
  0x24   :  { %267 = dma.done.wait [#allocation7], 512  }
  0x25   :  { %268 = vsyncadd [#allocation7], 4294966784  ;;  %v80_v0 = vld [vmem:[#allocation6] sm:$0xff]  ;;  %v81_v1 = vld [vmem:[#allocation6 + $0x8] sm:$0xff]  ;;  %v143_v48 = vlaneseq  ;;  %s276_s0 = smov [#allocation9]  }
  0x26   :  { %v92_v2 = vand.u32 2147483647, %v80_v0  ;;  %v93_v3 = vand.u32 2147483647, %v81_v1  ;;  %v82_v14 = vld [vmem:[#allocation3] sm:$0xff]  ;;  %v83_v15 = vld [vmem:[#allocation3 + $0x8] sm:$0xff] }
  0x27   :  { %v86_v17 = vmax.f32 %v80_v0, 0.0  ;;  %v88_v18 = vmul.f32 %v82_v14, %v80_v0  ;;  %v87_v21 = vmax.f32 %v81_v1, 0.0  ;;  %v89_v22 = vmul.f32 %v83_v15, %v81_v1  ;;  %v84_v32 = vld [vmem:[#allocation8] sm:$0xff]  ;;  %v85_v34 = vld [vmem:[#allocation8 + $0x8] sm:$0xff]  ;;  %s159_s2 = sshll.u32 %s276_s0, 4  ;;  %s160_s2 = int_to_ptr.vmem [resolvable:$true] %s159_s2 }
  0x28   :  { %v94_v4 = vsub.f32 0.0, %v92_v2  ;;  %v95_v5 = vsub.f32 0.0, %v93_v3  ;;  %v144_v49 = vshrl.u32 %v143_v48, 7  ;;  %v146_v50 = vand.u32 127, %v143_v48  ;;  %s245_s29 = scalar_lea.vmem %s160_s2, 128  ;;  %p250_p2 = scmp.lt.s32.totalorder %s160_s2, %s160_s2 }
  0x29   :  { %v90_v26 = vsub.f32 %v86_v17, %v88_v18  ;;  %v91_v29 = vsub.f32 %v87_v21, %v89_v22  ;;  %p246_p1 = scmp.ne.s32.totalorder %s160_s2, %s245_s29  ;;  %p251_p3 = scmp.lt.s32.totalorder %s245_s29, %s245_s29 }
  0x2a   :  { %v96_v6 = vmul.f32 1.442695, %v94_v4  ;;  %v98_v7 = vmul.f32 1.442695, %v95_v5  ;;  %vm147_vm2 = vcmp.eq.s32.totalorder %v144_v49, 0  ;;  %vm148_vm3 = vcmp.eq.s32.totalorder %v146_v50, 0 }
  0x2b   :  { %vm149_vm4 = vmand %vm147_vm2, %vm148_vm3  ;;  %p252_p4 = por %p251_p3, %p250_p2 }
  0x2c   :  { %177 = vpow2.f32 %v96_v6 }
  0x2d   :  { %179 = vpow2.f32 %v98_v7  ;;  %p253_p5 = pnand %p252_p4, %p246_p1 }
  0x39   :  { %v178_v8 = vpop.eup %177 }
  0x3a   :  { %v180_v9 = vpop.eup %179  ;;  %v100_v10 = vadd.f32 1.0, %v178_v8  ;;  %v103_v12 = vmul.f32 -0.5, %v178_v8  ;;  %v106_v19 = vand.u32 2147483647, %v178_v8 }
  0x3b   :  { %v109_v11 = vadd.f32 1.0, %v180_v9  ;;  %v112_v13 = vmul.f32 -0.5, %v180_v9  ;;  %v115_v23 = vand.u32 2147483647, %v180_v9 }
  0x3c   :  { %181 = vlog2.f32 %v100_v10  ;;  %v104_v16 = vadd.f32 1.0, %v103_v12  ;;  %vm107_vm0 = vcmp.lt.f32.partialorder %v106_v19, 0.0004427343 }
  0x3d   :  { %183 = vlog2.f32 %v109_v11  ;;  %v113_v20 = vadd.f32 1.0, %v112_v13  ;;  %vm116_vm1 = vcmp.lt.f32.partialorder %v115_v23, 0.0004427343 }
  0x3e   :  { %v105_v24 = vmul.f32 %v178_v8, %v104_v16 }
  0x3f   :  { %v114_v27 = vmul.f32 %v180_v9, %v113_v20 }
  0x49   :  { %v182_v25 = vpop.eup %181 }
  0x4a   :  { %v184_v28 = vpop.eup %183  ;;  %v102_v30 = vmul.f32 0.6931472, %v182_v25 }
  0x4b   :  { %v111_v31 = vmul.f32 0.6931472, %v184_v28 }
  0x4c   :  { %v108_v33 = vsel %vm107_vm0, %v105_v24, %v102_v30 }
  0x4d   :  { %v117_v35 = vsel %vm116_vm1, %v114_v27, %v111_v31  ;;  %v118_v36 = vadd.f32 %v108_v33, %v90_v26 }
  0x4e   :  { %v119_v37 = vadd.f32 %v117_v35, %v91_v29 }
  0x4f   :  { %v122_v38 = vmul.f32 %v118_v36, %v84_v32 }
  0x50   :  { %v123_v39 = vmul.f32 %v119_v37, %v85_v34 }
  0x52   :  { %v133_v40 = vadd.f32 %v123_v39, %v122_v38 }
  0x54   :  { %134 = vadd.xlane.f32.xlu0 %v133_v40 }
  0xdd   :  { %v135_v41 = vpop.xlane.xlu0 %134 }
  0xde   :  { %v136_v42 = vrot.slane %v135_v41, 4 }
  0xe0   :  { %v137_v43 = vadd.f32 %v136_v42, %v135_v41 }
  0xe2   :  { %v138_v44 = vrot.slane %v137_v43, 2 }
  0xe4   :  { %v139_v45 = vadd.f32 %v138_v44, %v137_v43 }
  0xe6   :  { %v140_v46 = vrot.slane %v139_v45, 1 }
  0xe8   :  { %v141_v47 = vadd.f32 %v140_v46, %v139_v45 }
  0xea   :  { %169 = vpush %v141_v47 }
 0x11b   :  { %s170_s28 = spop %169 }
 0x11c   :  { %v150_v51 = vstv %s170_s28 }
 0x11d   :  { %v151_v52 = vsel %vm149_vm4, %v150_v51, 0.0 }
 0x11e   :  { %152 = vst [vmem:[#allocation9] sm:$0xff] %v151_v52 }
 0x11f   :  { %256 = shalt.err (!%p253_p5)
}
 0x120   :  { %162 = dma.vmem_to_hbm [thread:$0]  %s160_s2, 128, %s312_s3, [#allocation5]  }
 0x121   :  { %269 = dma.done.wait [#allocation5], 128  }
 0x122   :  { %270 = vsyncadd [#allocation5], 4294967168 }
 0x123   :  { %166 = vsyncpa [#allocation4], 1 }
 0x124   :  { %167 = vsyncpa [#allocation7], 1 }
 0x125   :  { %168 = vsyncpa [#allocation5], 1 }

</bundles_post_ra>
